<compile_context>
chip_gen: v6e
topology: v6e:2x2x1
jax: 0.10.0
libtpu: 0.0.40
codegen_flags: <defaults>
</compile_context>

<pallas_src>
import jax
import jax.numpy as jnp
from jax.experimental import pallas as pl
from jax.experimental.pallas import tpu as pltpu

HIDDEN = 128


def critic_kernel(xT_ref, wT_ref, b_ref, wo_ref, bo_ref, out_ref):
    """One (K, TB) batch tile of the critic forward (batch lives in lanes).

    xT_ref : (K, TB)       concatenated [s, a] transposed, bf16
    wT_ref : (HIDDEN, K)   fused [Ws^T ; Wa^T]^T, bf16
    b_ref  : (HIDDEN, 1)   fused bias column (bs + ba), f32
    wo_ref : (HIDDEN, 1)   output weight column, f32
    bo_ref : (1, 1)        output bias scalar in SMEM, f32
    out_ref: (1, TB)       lane-dense output tile, f32
    """
    # Single fused MXU pass: (128, K) @ (K, TB) -> (128, TB), f32 accumulate.
    h = jnp.dot(wT_ref[...], xT_ref[...], preferred_element_type=jnp.float32)
    h = jnp.maximum(h + b_ref[...], 0.0)              # bias + ReLU on VPU (f32)
    # 128 -> 1 projection: VPU multiply + cross-sublane (XLU) reduction; keeps
    # the second projection off the MXU and the output lane-dense.
    q = jnp.sum(h * wo_ref[...], axis=0, keepdims=True) + bo_ref[0, 0]
    out_ref[...] = q.astype(out_ref.dtype)


def _pick_batch_tile(B):
    """Lane-dense batch tile: a multiple of 128, capped at 2048 lanes.

    For B > 128 the tile targets >= 2 grid steps so v7x can shard the
    "parallel" batch axis across its two TensorCores; per-step overhead
    (~0.35 us) stays negligible at these tile sizes.
    """
    if B <= 128:
        return 128
    cap = 2048
    tb = min(pl.next_power_of_2(pl.cdiv(B, 2)), cap)
    return max(tb, 128)


def critic_forward(s, a, fused_params):
    wT, b_col, wo_col, bo = fused_params
    # Layout plumbing only: batch-in-lanes operand, bf16 for the MXU.
    xT = jnp.concatenate([s, a], axis=-1).T.astype(wT.dtype)   # (K, B)
    K, B = xT.shape

    tb = _pick_batch_tile(B)
    num_tiles = pl.cdiv(B, tb)
    B_pad = num_tiles * tb
    if B_pad != B:
        xT = jnp.pad(xT, ((0, 0), (0, B_pad - B)))             # zero tail tile

    def full_spec(shape):
        return pl.BlockSpec(shape, lambda i: (0, 0))           # resident weights

    out = pl.pallas_call(
        critic_kernel,
        out_shape=jax.ShapeDtypeStruct((1, B_pad), jnp.float32),
        grid=(num_tiles,),
        in_specs=[
            pl.BlockSpec((K, tb), lambda i: (0, i)),            # x^T batch tile
            full_spec(wT.shape),                                # (HIDDEN, K) bf16
            full_spec(b_col.shape),                             # (HIDDEN, 1) f32
            full_spec(wo_col.shape),                            # (HIDDEN, 1) f32
            pl.BlockSpec(memory_space=pltpu.MemorySpace.SMEM),  # out bias scalar
        ],
        out_specs=pl.BlockSpec((1, tb), lambda i: (0, i)),      # lane-dense output
        compiler_params=pltpu.CompilerParams(
            dimension_semantics=("parallel",)),                 # v7x: 2-TC sharding
    )(xT, wT, b_col, wo_col, bo)

    return out[0, :B].reshape(B, 1)


def init_params(key, n_states, n_action, hidden=HIDDEN):
    """Mirror PyTorch init: weights ~ N(0, 0.1), biases ~ U(-1/sqrt(fan_in), 1/sqrt(fan_in))."""
    ks = jax.random.split(key, 6)
    ws_t = 0.1 * jax.random.normal(ks[0], (n_states, hidden), jnp.float32)
    bs = jax.random.uniform(ks[1], (1, hidden), jnp.float32,
                            -1.0 / jnp.sqrt(n_states), 1.0 / jnp.sqrt(n_states))
    wa_t = 0.1 * jax.random.normal(ks[2], (n_action, hidden), jnp.float32)
    ba = jax.random.uniform(ks[3], (1, hidden), jnp.float32,
                            -1.0 / jnp.sqrt(n_action), 1.0 / jnp.sqrt(n_action))
    wo_t = 0.1 * jax.random.normal(ks[4], (hidden, 1), jnp.float32)
    bo = jax.random.uniform(ks[5], (1, 1), jnp.float32,
                            -1.0 / jnp.sqrt(hidden), 1.0 / jnp.sqrt(hidden))
    return ws_t, bs, wa_t, ba, wo_t, bo


def fuse_params(params, compute_dtype=jnp.bfloat16):
    """One-time fusion + layout of the weights (done at init, not per call)."""
    ws_t, bs, wa_t, ba, wo_t, bo = params
    wT = jnp.concatenate([ws_t, wa_t], axis=0).T.astype(compute_dtype)  # (hidden, K)
    b_col = (bs + ba).T.astype(jnp.float32)                             # (hidden, 1)
    wo_col = wo_t.astype(jnp.float32)                                   # (hidden, 1)
    return wT, b_col, wo_col, bo.astype(jnp.float32)


def critic_ref(s, a, params):
    """Pure-JAX f32 reference matching the PyTorch module (unfused)."""
    ws_t, bs, wa_t, ba, wo_t, bo = params
    x3 = jnp.maximum(s @ ws_t + bs + a @ wa_t + ba, 0.0)
    return x3 @ wo_t + bo


def critic_ref_matched(s, a, fused_params):
    """Reference applying the same bf16 operand quantization as the kernel."""
    wT, b_col, wo_col, bo = fused_params
    xT = jnp.concatenate([s, a], axis=-1).T.astype(wT.dtype).astype(jnp.float32)
    h = jnp.maximum(jnp.dot(wT.astype(jnp.float32), xT) + b_col, 0.0)
    q = jnp.sum(h * wo_col, axis=0, keepdims=True) + bo[0, 0]
    return q.T  # (B, 1)


if __name__ == "__main__":
    # LunarLanderContinuous-v2: n_states = 8, n_action = 2
    B, n_states, n_action = 8, 8, 2

    key = jax.random.PRNGKey(0)
    k_s, k_a, k_p = jax.random.split(key, 3)
    s = jax.random.normal(k_s, (B, n_states), jnp.float32)
    a = jax.random.normal(k_a, (B, n_action), jnp.float32)

    params = init_params(k_p, n_states, n_action)
    fused = fuse_params(params)

    out = critic_forward(s, a, fused)
    out = jax.block_until_ready(out)
    assert out.shape == (B, 1)

    # Tight check against a reference with matched bf16-operand quantization.
    ref_m = critic_ref_matched(s, a, fused)
    assert jnp.allclose(out, ref_m, atol=1e-3, rtol=1e-3), (
        f"matched-precision max abs diff {jnp.max(jnp.abs(out - ref_m))}")

    # Semantic check against the pure-f32 PyTorch-equivalent reference; the
    # tolerance accounts for bf16 MXU operands (f32 accumulation).
    ref = critic_ref(s, a, params)
    assert jnp.allclose(out, ref, atol=2e-2, rtol=2e-2), (
        f"f32-reference max abs diff {jnp.max(jnp.abs(out - ref))}")

    print("KERNEL_OK")
</pallas_src>

<mosaic_0001>
module attributes {stable_mosaic.version = 11 : i64} {
  func.func @critic_kernel(%arg0: i32, %arg1: memref<10x128xbf16, #tpu.memory_space<vmem>>, %arg2: memref<128x10xbf16, #tpu.memory_space<vmem>>, %arg3: memref<128x1xf32, #tpu.memory_space<vmem>>, %arg4: memref<128x1xf32, #tpu.memory_space<vmem>>, %arg5: memref<1x1xf32, #tpu.memory_space<smem>>, %arg6: memref<1x128xf32, #tpu.memory_space<vmem>>) attributes {dimension_semantics = [#tpu.dimension_semantics<parallel>], iteration_bounds = array<i64: 1>, scalar_prefetch = 0 : i64, scratch_operands = 0 : i64, tpu.core_type = #tpu.core_type<tc>, window_params = [{transform_indices = @transform_0, window_bounds = array<i64: 10, 128>}, {pipeline_mode = #tpu.pipeline_mode<synchronous>, transform_indices = @transform_1, window_bounds = array<i64: 128, 10>}, {pipeline_mode = #tpu.pipeline_mode<synchronous>, transform_indices = @transform_2, window_bounds = array<i64: 128, 1>}, {pipeline_mode = #tpu.pipeline_mode<synchronous>, transform_indices = @transform_3, window_bounds = array<i64: 128, 1>}, {transform_indices = @transform_4, window_bounds = array<i64: 1, 1>}, {transform_indices = @transform_5, window_bounds = array<i64: 1, 128>}]} {
    %c0 = arith.constant 0 : index
    %c0_0 = arith.constant 0 : index
    %0 = vector.load %arg2[%c0, %c0_0] : memref<128x10xbf16, #tpu.memory_space<vmem>>, vector<128x10xbf16>
    %c0_1 = arith.constant 0 : index
    %c0_2 = arith.constant 0 : index
    %1 = vector.load %arg1[%c0_1, %c0_2] : memref<10x128xbf16, #tpu.memory_space<vmem>>, vector<10x128xbf16>
    %cst = arith.constant dense<0.000000e+00> : vector<128x128xf32>
    %2 = tpu.matmul %0, %1, %cst {dimension_numbers = #tpu.dot_dimension_numbers<[1], [0], [0], [1], [0, 0, 1, 1], [], []>} : vector<128x10xbf16>, vector<10x128xbf16>, vector<128x128xf32> -> vector<128x128xf32>
    %c0_3 = arith.constant 0 : index
    %c0_4 = arith.constant 0 : index
    %3 = vector.load %arg3[%c0_3, %c0_4] : memref<128x1xf32, #tpu.memory_space<vmem>>, vector<128x1xf32>
    %4 = vector.broadcast %3 : vector<128x1xf32> to vector<128x128xf32>
    %5 = arith.addf %2, %4 : vector<128x128xf32>
    %cst_5 = arith.constant 0.000000e+00 : f32
    %6 = vector.broadcast %cst_5 : f32 to vector<128x128xf32>
    %7 = arith.maximumf %5, %6 : vector<128x128xf32>
    %c0_6 = arith.constant 0 : index
    %c0_7 = arith.constant 0 : index
    %8 = vector.load %arg4[%c0_6, %c0_7] : memref<128x1xf32, #tpu.memory_space<vmem>>, vector<128x1xf32>
    %9 = vector.broadcast %8 : vector<128x1xf32> to vector<128x128xf32>
    %10 = arith.mulf %7, %9 : vector<128x128xf32>
    %cst_8 = arith.constant dense<0.000000e+00> : vector<128xf32>
    %11 = vector.multi_reduction <add>, %10, %cst_8 [0] : vector<128x128xf32> to vector<128xf32>
    %12 = vector.shape_cast %11 : vector<128xf32> to vector<1x128xf32>
    %c0_9 = arith.constant 0 : index
    %c0_10 = arith.constant 0 : index
    %13 = memref.load %arg5[%c0_9, %c0_10] : memref<1x1xf32, #tpu.memory_space<smem>>
    %14 = vector.broadcast %13 : f32 to vector<1x128xf32>
    %15 = arith.addf %12, %14 : vector<1x128xf32>
    %c0_11 = arith.constant 0 : index
    %c0_12 = arith.constant 0 : index
    %16 = vector.load %arg6[%c0_11, %c0_12] : memref<1x128xf32, #tpu.memory_space<vmem>>, vector<1x128xf32>
    tpu.vector_store %arg6[%c0_11, %c0_12], %15 {strides = array<i32>} : memref<1x128xf32, #tpu.memory_space<vmem>>, vector<1x128xf32>,
    return
  }
  func.func @transform_0(%arg0: i32) -> (i32, i32) {
    %c0_i32 = arith.constant 0 : i32
    %c0_i32_0 = arith.constant 0 : i32
    return %c0_i32, %arg0 : i32, i32
  }
  func.func @transform_1(%arg0: i32) -> (i32, i32) {
    %c0_i32 = arith.constant 0 : i32
    %c0_i32_0 = arith.constant 0 : i32
    %c0_i32_1 = arith.constant 0 : i32
    return %c0_i32, %c0_i32_0 : i32, i32
  }
  func.func @transform_2(%arg0: i32) -> (i32, i32) {
    %c0_i32 = arith.constant 0 : i32
    %c0_i32_0 = arith.constant 0 : i32
    %c0_i32_1 = arith.constant 0 : i32
    return %c0_i32, %c0_i32_0 : i32, i32
  }
  func.func @transform_3(%arg0: i32) -> (i32, i32) {
    %c0_i32 = arith.constant 0 : i32
    %c0_i32_0 = arith.constant 0 : i32
    %c0_i32_1 = arith.constant 0 : i32
    return %c0_i32, %c0_i32_0 : i32, i32
  }
  func.func @transform_4(%arg0: i32) -> (i32, i32) {
    %c0_i32 = arith.constant 0 : i32
    %c0_i32_0 = arith.constant 0 : i32
    %c0_i32_1 = arith.constant 0 : i32
    return %c0_i32, %c0_i32_0 : i32, i32
  }
  func.func @transform_5(%arg0: i32) -> (i32, i32) {
    %c0_i32 = arith.constant 0 : i32
    %c0_i32_0 = arith.constant 0 : i32
    return %c0_i32, %arg0 : i32, i32
  }
}

</mosaic_0001>

<bundles_post_ra>
// kernel: tpu_custom_call.1
= control target key start
LH: loop header
LB: loop body
LE: loop exit
PB: predicated region body
PF: predicated region fallthrough
CT: control target
= control target key end

     0   :  { %vm207_vm0 = vcmask 1044480   ;;  %v558_v2 = vmov 0   ;;  %vm182_vm1 = vcmask 80896   ;;  %s727_s0 = inlined_call_operand.vmem [shape: bf16[10,128], index: 0, kind: input, shape index: {}]   ;;  %s728_s1 = inlined_call_operand.vmem [shape: bf16[128,10], index: 1, kind: input, shape index: {}]   ;;  %s729_s2 = inlined_call_operand.vmem [shape: f32[128,1], index: 2, kind: input, shape index: {}]   ;;  %s730_s3 = inlined_call_operand.vmem [shape: f32[128,1], index: 3, kind: input, shape index: {}]   ;;  %s731_s4 = inlined_call_operand.<no memory space> [shape: f32[1,1], index: 4, kind: input, shape index: {}]   ;;  %s732_s5 = inlined_call_operand.hbm [shape: f32[1,128], index: 5, kind: output, shape index: {}]  }
   0x1   :  { %v43_v0 = vld [vmem:[%s729_s2 + $0x10] sm:$0xff]  ;;  %v41_v1 = vld [vmem:[%s729_s2] sm:$0xff]  ;;  %526 = vset.pattern.permute.xlu1 %v558_v2  ;;  %525 = vset.pattern.permute.xlu0 %v558_v2  ;;  %v44_v4 = vld [vmem:[%s729_s2 + $0x18] sm:$0xff] }
   0x2   :  { %v527_v3 = vld [vmem:[%s727_s0] sm:$0x1f]   ;;  %69 = vperm.xlu1 %526, %v43_v0   ;;  %59 = vperm.xlu0 %525, %v41_v1   ;;  %v42_v5 = vld [vmem:[%s729_s2 + $0x8] sm:$0xff]  ;;  %v532_v13 = vld [vmem:[%s728_s1 + $0x10] sm:$0xff]  }
   0x3   :  { %521 = vmatprep.subr.msk.bf16.mxu0 %vm207_vm0, %v527_v3  ;;  %522 = vmatprep.subr.msk.bf16.mxu1 %vm207_vm0, %v527_v3  ;;  %v209_v6 = vsel %vm207_vm0, %v527_v3, 0  ;;  %v528_v7 = vld [vmem:[%s728_s1] sm:$0xff]   ;;  %v530_v9 = vld [vmem:[%s728_s1 + $0x8] sm:$0xff]   ;;  %v533_v14 = vld [vmem:[%s728_s1 + $0x30] sm:$0xff]  }
   0x4   :  { %502 = vmatpush3.bf16.msra.mxu0 %v209_v6  ;;  %520 = vmatpush3.bf16.msra.mxu1 %v209_v6  ;;  %v529_v8 = vld [vmem:[%s728_s1 + $0x20] sm:$0xff]   ;;  %v531_v10 = vld [vmem:[%s728_s1 + $0x28] sm:$0xff]   ;;  %v326_v15 = vld [vmem:[%s730_s3 + $0x10] sm:$0xff] }
   0x5   :  { %503 = vmatprep.mubr.msk.bf16.mxu0 %vm182_vm1, %v528_v7  ;;  %511 = vmatprep.mubr.msk.bf16.mxu1 %vm182_vm1, %v529_v8  ;;  %v324_v11 = vld [vmem:[%s730_s3] sm:$0xff]  ;;  %v325_v16 = vld [vmem:[%s730_s3 + $0x8] sm:$0xff]  ;;  %v534_v17 = vld [vmem:[%s728_s1 + $0x18] sm:$0xff]  }
   0x6   :  { %74 = vperm.xlu1 %526, %v44_v4   ;;  %64 = vperm.xlu0 %525, %v42_v5   ;;  %v45_v12 = vld [vmem:[%s729_s2 + $0x20] sm:$0xff]  ;;  %v535_v18 = vld [vmem:[%s728_s1 + $0x38] sm:$0xff]   ;;  %v46_v20 = vld [vmem:[%s729_s2 + $0x28] sm:$0xff] }
   0x7   :  { %504 = vmatmul.mubr.msk.bf16.vlgmr.msra.gmra.mxu0 %vm182_vm1, %v530_v9  ;;  %512 = vmatmul.mubr.msk.bf16.vlgmr.msra.gmra.mxu1 %vm182_vm1, %v531_v10  ;;  %v327_v19 = vld [vmem:[%s730_s3 + $0x18] sm:$0xff]  ;;  %v328_v21 = vld [vmem:[%s730_s3 + $0x20] sm:$0xff]  ;;  %v47_v22 = vld [vmem:[%s729_s2 + $0x30] sm:$0xff] }
   0x8   :  { %507 = vmatprep.mubr.msk.bf16.mxu0 %vm182_vm1, %v532_v13  ;;  %515 = vmatprep.mubr.msk.bf16.mxu1 %vm182_vm1, %v533_v14 }
   0xa   :  { %342 = vperm.xlu1 %526, %v324_v11   ;;  %79 = vperm.xlu0 %525, %v45_v12  }
   0xe   :  { %352 = vperm.xlu1 %526, %v326_v15   ;;  %347 = vperm.xlu0 %525, %v325_v16  }
   0xf   :  { %508 = vmatmul.mubr.msk.bf16.gmra.mxu0 %vm182_vm1, %v534_v17  ;;  %516 = vmatmul.mubr.msk.bf16.gmra.mxu1 %vm182_vm1, %v535_v18 }
  0x12   :  { %357 = vperm.xlu1 %526, %v327_v19   ;;  %84 = vperm.xlu0 %525, %v46_v20  }
  0x13   :  { %11 = vsyncpa [#allocation4], 0  ;;  %v329_v23 = vld [vmem:[%s730_s3 + $0x28] sm:$0xff]  ;;  %v48_v24 = vld [vmem:[%s729_s2 + $0x38] sm:$0xff]  ;;  %s559_s20 = smov [#allocation3]  }
  0x14   :  { %v330_v25 = vld [vmem:[%s730_s3 + $0x30] sm:$0xff]  ;;  %v49_v26 = vld [vmem:[%s729_s2 + $0x40] sm:$0xff]  ;;  %v331_v27 = vld [vmem:[%s730_s3 + $0x38] sm:$0xff]  ;;  %s467_s21 = sshll.u32 %s559_s20, 4  ;;  %s468_s21 = int_to_ptr.vmem [resolvable:$true] %s467_s21 }
  0x15   :  { %v50_v28 = vld [vmem:[%s729_s2 + $0x48] sm:$0xff]  ;;  %v332_v29 = vld [vmem:[%s730_s3 + $0x40] sm:$0xff]  ;;  %v51_v30 = vld [vmem:[%s729_s2 + $0x50] sm:$0xff]  ;;  %s536_s22 = scalar_lea.vmem %s468_s21, 16  ;;  %s540_s23 = scalar_lea.vmem %s468_s21, 32 }
  0x16   :  { %362 = vperm.xlu1 %526, %v328_v21   ;;  %89 = vperm.xlu0 %525, %v47_v22   ;;  %v333_v31 = vld [vmem:[%s730_s3 + $0x48] sm:$0xff]  ;;  %v52_v32 = vld [vmem:[%s729_s2 + $0x58] sm:$0xff]  ;;  %v334_v33 = vld [vmem:[%s730_s3 + $0x50] sm:$0xff]  ;;  %p537_p0 = scmp.ne.s32.totalorder %s468_s21, %s536_s22  ;;  %p541_p1 = scmp.lt.s32.totalorder %s468_s21, %s468_s21 }
  0x17   :  { %v53_v34 = vld [vmem:[%s729_s2 + $0x60] sm:$0xff]  ;;  %v335_v35 = vld [vmem:[%s730_s3 + $0x58] sm:$0xff]  ;;  %v54_v36 = vld [vmem:[%s729_s2 + $0x68] sm:$0xff]  ;;  %p542_p2 = scmp.lt.s32.totalorder %s540_s23, %s536_s22 }
  0x18   :  { %v336_v37 = vld [vmem:[%s730_s3 + $0x60] sm:$0xff]  ;;  %v55_v38 = vld [vmem:[%s729_s2 + $0x70] sm:$0xff]  ;;  %v337_v39 = vld [vmem:[%s730_s3 + $0x68] sm:$0xff] }
  0x19   :  { %v56_v40 = vld [vmem:[%s729_s2 + $0x78] sm:$0xff]  ;;  %v338_v42 = vld [vmem:[%s730_s3 + $0x70] sm:$0xff]  ;;  %p543_p3 = por %p542_p2, %p541_p1 }
  0x1a   :  { %367 = vperm.xlu1 %526, %v329_v23   ;;  %94 = vperm.xlu0 %525, %v48_v24   ;;  %v339_v41 = vld [vmem:[%s730_s3 + $0x78] sm:$0xff] }
  0x1b   :  { %p544_p4 = pnand %p543_p3, %p537_p0 }
  0x1e   :  { %372 = vperm.xlu1 %526, %v330_v25   ;;  %99 = vperm.xlu0 %525, %v49_v26  }
  0x22   :  { %377 = vperm.xlu1 %526, %v331_v27   ;;  %104 = vperm.xlu0 %525, %v50_v28  }
  0x26   :  { %382 = vperm.xlu1 %526, %v332_v29   ;;  %109 = vperm.xlu0 %525, %v51_v30  }
  0x2a   :  { %387 = vperm.xlu1 %526, %v333_v31   ;;  %114 = vperm.xlu0 %525, %v52_v32  }
  0x2e   :  { %392 = vperm.xlu1 %526, %v334_v33   ;;  %119 = vperm.xlu0 %525, %v53_v34  }
  0x32   :  { %397 = vperm.xlu1 %526, %v335_v35   ;;  %124 = vperm.xlu0 %525, %v54_v36  }
  0x36   :  { %402 = vperm.xlu1 %526, %v336_v37   ;;  %129 = vperm.xlu0 %525, %v55_v38  }
  0x3a   :  { %407 = vperm.xlu1 %526, %v337_v39   ;;  %134 = vperm.xlu0 %525, %v56_v40  }
  0x3e   :  { %417 = vperm.xlu1 %526, %v339_v41   ;;  %412 = vperm.xlu0 %525, %v338_v42  }
  0x7d   :  { %v60_v43 = vpop.permute.xlu0 %59  ;;  %v70_v44 = vpop.permute.xlu1 %69 }
  0x81   :  { %v65_v45 = vpop.permute.xlu0 %64  ;;  %v75_v46 = vpop.permute.xlu1 %74 }
  0x85   :  { %v80_v47 = vpop.permute.xlu0 %79  ;;  %v343_v48 = vpop.permute.xlu1 %342 }
  0x89   :  { %v348_v49 = vpop.permute.xlu0 %347  ;;  %v353_v50 = vpop.permute.xlu1 %352 }
  0x8d   :  { %v85_v51 = vpop.permute.xlu0 %84  ;;  %v358_v52 = vpop.permute.xlu1 %357 }
  0x91   :  { %v90_v53 = vpop.permute.xlu0 %89  ;;  %v363_v54 = vpop.permute.xlu1 %362 }
  0x95   :  { %v95_v55 = vpop.permute.xlu0 %94  ;;  %v368_v56 = vpop.permute.xlu1 %367 }
  0x99   :  { %v100_v57 = vpop.permute.xlu0 %99  ;;  %v373_v58 = vpop.permute.xlu1 %372 }
  0x9d   :  { %v105_v59 = vpop.permute.xlu0 %104  ;;  %v378_v60 = vpop.permute.xlu1 %377 }
  0xa1   :  { %v110_v61 = vpop.permute.xlu0 %109  ;;  %v383_v63 = vpop.permute.xlu1 %382 }
  0xa5   :  { %v115_v5 = vpop.permute.xlu0 %114  ;;  %v388_v9 = vpop.permute.xlu1 %387 }
  0xa9   :  { %v120_v18 = vpop.permute.xlu0 %119  ;;  %v393_v29 = vpop.permute.xlu1 %392 }
  0xad   :  { %v125_v41 = vpop.permute.xlu0 %124 }
  0xc7   :  { %v505_v62 = vpop.f32.mrf.mxu0  ;;  %v513_v0 = vpop.f32.mrf.mxu1 }
  0xc8   :  { %v254_v6 = vadd.f32 %v505_v62, %v70_v44  ;;  %v130_v62 = vpop.permute.xlu0 %129 }
  0xc9   :  { %v245_v1 = vpop.f32.mrf.mxu0  ;;  %v277_v3 = vpop.f32.mrf.mxu1 }
  0xca   :  { %v246_v2 = vadd.f32 %v245_v1, %v60_v43  ;;  %v310_v15 = vmax.f32 %v254_v6, 0.0  ;;  %v278_v35 = vadd.f32 %v277_v3, %v100_v57 }
  0xcb   :  { %v506_v4 = vpop.f32.mrf.mxu0  ;;  %v514_v7 = vpop.f32.mrf.mxu1 }
  0xcc   :  { %v308_v10 = vmax.f32 %v246_v2, 0.0  ;;  %v257_v11 = vadd.f32 %v506_v4, %v75_v46  ;;  %v422_v25 = vmul.f32 %v353_v50, %v310_v15  ;;  %v398_v46 = vpop.permute.xlu1 %397 }
  0xcd   :  { %v248_v8 = vpop.f32.mrf.mxu0  ;;  %v280_v13 = vpop.f32.mrf.mxu1 }
  0xce   :  { %v249_v12 = vadd.f32 %v248_v8, %v65_v45  ;;  %v420_v19 = vmul.f32 %v343_v48, %v308_v10  ;;  %v311_v20 = vmax.f32 %v257_v11, 0.0  ;;  %v281_v42 = vadd.f32 %v280_v13, %v105_v59 }
  0xcf   :  { %v509_v14 = vpop.f32.mrf.mxu0  ;;  %v517_v23 = vpop.f32.mrf.mxu1  ;;  %v286_v48 = vadd.f32 %v513_v0, %v110_v61 }
  0xd0   :  { %v309_v16 = vmax.f32 %v249_v12, 0.0  ;;  %v270_v27 = vadd.f32 %v509_v14, %v90_v53  ;;  %v423_v31 = vmul.f32 %v358_v52, %v311_v20  ;;  %v289_v53 = vadd.f32 %v514_v7, %v115_v5  ;;  %v403_v59 = vpop.permute.xlu1 %402  ;;  %v135_v12 = vpop.permute.xlu0 %134 }
  0xd1   :  { %v261_v17 = vpop.f32.mrf.mxu0  ;;  %v293_v36 = vpop.f32.mrf.mxu1  ;;  %v302_v61 = vadd.f32 %v517_v23, %v130_v62 }
  0xd2   :  { %v421_v21 = vmul.f32 %v348_v49, %v309_v16  ;;  %v262_v22 = vadd.f32 %v261_v17, %v80_v47  ;;  %v314_v37 = vmax.f32 %v270_v27, 0.0  ;;  %v316_v49 = vmax.f32 %v278_v35, 0.0 }
  0xd3   :  { %v510_v24 = vpop.f32.mrf.mxu0  ;;  %v518_v47 = vpop.f32.mrf.mxu1  ;;  %v294_v3 = vadd.f32 %v293_v36, %v120_v18  ;;  %v319_v6 = vmax.f32 %v289_v53, 0.0  ;;  %v322_v15 = vmax.f32 %v302_v61, 0.0 }
  0xd4   :  { %v436_v26 = vadd.f32 %v421_v21, %v420_v19  ;;  %v312_v28 = vmax.f32 %v262_v22, 0.0  ;;  %v273_v33 = vadd.f32 %v510_v24, %v95_v55  ;;  %v426_v50 = vmul.f32 %v373_v58, %v314_v37  ;;  %v408_v14 = vpop.permute.xlu1 %407  ;;  %v413_v20 = vpop.permute.xlu0 %412 }
  0xd5   :  { %v264_v30 = vpop.f32.mrf.mxu0  ;;  %v317_v55 = vmax.f32 %v281_v42, 0.0  ;;  %v296_v1 = vpop.f32.mrf.mxu1  ;;  %v428_v2 = vmul.f32 %v383_v63, %v316_v49  ;;  %v320_v0 = vmax.f32 %v294_v3, 0.0  ;;  %v431_v5 = vmul.f32 %v398_v46, %v319_v6 }
  0xd6   :  { %v437_v32 = vadd.f32 %v436_v26, %v422_v25  ;;  %v265_v34 = vadd.f32 %v264_v30, %v85_v51  ;;  %v424_v38 = vmul.f32 %v363_v54, %v312_v28  ;;  %v315_v44 = vmax.f32 %v273_v33, 0.0 }
  0xd7   :  { %v318_v54 = vmax.f32 %v286_v48, 0.0  ;;  %v429_v8 = vmul.f32 %v388_v9, %v317_v55  ;;  %v297_v10 = vadd.f32 %v296_v1, %v125_v41  ;;  %v305_v7 = vadd.f32 %v518_v47, %v135_v12 }
  0xd8   :  { %v438_v39 = vadd.f32 %v437_v32, %v423_v31  ;;  %v313_v40 = vmax.f32 %v265_v34, 0.0  ;;  %v427_v51 = vmul.f32 %v378_v60, %v315_v44  ;;  %v432_v16 = vmul.f32 %v403_v59, %v320_v0  ;;  %v418_v22 = vpop.permute.xlu1 %417 }
  0xd9   :  { %v430_v11 = vmul.f32 %v393_v29, %v318_v54  ;;  %v321_v60 = vmax.f32 %v297_v10, 0.0  ;;  %v323_v17 = vmax.f32 %v305_v7, 0.0  ;;  %v434_v9 = vmul.f32 %v413_v20, %v322_v15 }
  0xda   :  { %v439_v43 = vadd.f32 %v438_v39, %v424_v38  ;;  %v425_v45 = vmul.f32 %v368_v56, %v313_v40  ;;  %v458_v31 = vstv %s731_s4 }
  0xdb   :  { %v433_v18 = vmul.f32 %v408_v14, %v321_v60  ;;  %v435_v24 = vmul.f32 %v418_v22, %v323_v17 }
  0xdc   :  { %v440_v52 = vadd.f32 %v439_v43, %v425_v45 }
  0xde   :  { %v441_v57 = vadd.f32 %v440_v52, %v426_v50 }
  0xe0   :  { %v442_v4 = vadd.f32 %v441_v57, %v427_v51 }
  0xe2   :  { %v443_v56 = vadd.f32 %v442_v4, %v428_v2 }
  0xe4   :  { %v444_v58 = vadd.f32 %v443_v56, %v429_v8 }
  0xe6   :  { %v445_v13 = vadd.f32 %v444_v58, %v430_v11 }
  0xe8   :  { %v446_v63 = vadd.f32 %v445_v13, %v431_v5 }
  0xea   :  { %v447_v19 = vadd.f32 %v446_v63, %v432_v16 }
  0xec   :  { %v448_v21 = vadd.f32 %v447_v19, %v433_v18 }
  0xee   :  { %v449_v23 = vadd.f32 %v448_v21, %v434_v9 }
  0xf0   :  { %v450_v25 = vadd.f32 %v449_v23, %v435_v24 }
  0xf2   :  { %v451_v26 = vrot.slane %v450_v25, 4 }
  0xf4   :  { %v452_v27 = vadd.f32 %v451_v26, %v450_v25 }
  0xf6   :  { %v453_v28 = vrot.slane %v452_v27, 2 }
  0xf8   :  { %v454_v29 = vadd.f32 %v453_v28, %v452_v27 }
  0xfa   :  { %v455_v30 = vrot.slane %v454_v29, 1 }
  0xfc   :  { %v456_v32 = vadd.f32 %v455_v30, %v454_v29 }
  0xfe   :  { %v459_v33 = vadd.f32 %v458_v31, %v456_v32 }
 0x100   :  { %460 = vst [vmem:[#allocation3] sm:$0x1] %v459_v33 }
 0x101   :  { %547 = shalt.err (!%p544_p4)
}
 0x102   :  { %470 = dma.vmem_to_hbm [thread:$0]  %s468_s21, 16, %s732_s5, [#allocation4]  }
 0x103   :  { %556 = dma.done.wait [#allocation4], 16  }
 0x104   :  { %557 = vsyncadd [#allocation4], 4294967280 }
 0x105   :  { %474 = vsyncpa [#allocation4], 1 }

</bundles_post_ra>
